<compile_context>
chip_gen: v7x
topology: tpu7x:2x2x1
jax: 0.10.0
libtpu: 0.0.40
codegen_flags: <defaults>
</compile_context>

<pallas_src>
import functools

import jax
import jax.numpy as jnp
from jax.experimental import pallas as pl
from jax.experimental.pallas import tpu as pltpu


def _round_up(x, m):
    return (x + m - 1) // m * m


def _vmem_capacity_bytes():
    """Physical per-core VMEM; conservative 64 MiB (v7x per-TC) fallback."""
    try:
        cap = getattr(pltpu.get_tpu_info(), "vmem_capacity_bytes", None)
        if cap:
            return int(cap)
    except Exception:
        pass
    return 64 << 20


def _choose_row_tile_and_vmem(rows, H, x_dtype, res_dtype, out_dtype, w_dtype,
                              tm):
    """Pick the row-tile size and an explicit VMEM limit for the kernel."""
    isz = lambda dt: jnp.dtype(dt).itemsize
    # ~20% headroom for compiler-internal scratch (v7x has only 64 MiB).
    vmem_cap = int(_vmem_capacity_bytes() * 0.8)

    # Grid-invariant operands: Pallas allocates 2 buffers even though their
    # constant block index means they are DMA'd only once.
    # TODO(synk): for H >= ~4-8k on v7x the resident W^T no longer fits; a
    # K-tiled grid with an f32 accumulator (or a single-buffered weight via
    # pl.Buffered(1)) is the escape hatch.
    resident = 2 * H * H * isz(w_dtype) + 2 * 3 * max(H, 128) * 4

    # Per-row VMEM: double-buffered x/res/out tiles + ~2 full-width f32
    # intermediates for the matmul accumulator / LayerNorm epilogue.
    per_row = 2 * H * (isz(x_dtype) + isz(res_dtype) + isz(out_dtype)) + 2 * H * 4

    if tm is None:
        tm = 1024            # v7x amortizes per-step overhead; v6e/v5e saturate HBM by ~512
        if rows >= 16:
            # Keep at least 2 grid steps so megacore can shard the row axis.
            tm = min(tm, _round_up(pl.cdiv(rows, 2), 8))
    else:
        tm = max(8, _round_up(int(tm), 8))

    tm_fit = (vmem_cap - resident - (2 << 20)) // max(per_row, 1)
    tm_fit = max(8, (tm_fit // 8) * 8)
    tm = max(8, min(tm, tm_fit, _round_up(rows, 8)))
    if rows < 8:
        tm = rows            # block dim == full array dim (always legal)

    need = resident + tm * per_row
    vmem_limit = int(min(max(2 * need, 16 << 20), vmem_cap))
    return tm, vmem_limit


def _cross_self_output_kernel(x_ref, res_ref, w_ref, p_ref, o_ref, *, eps):
    """One (tm, H) row-tile of: LayerNorm(x @ W^T + b + residual).

    x_ref, res_ref : (tm, H) activation tiles in their *native* dtype
    w_ref          : (H, H) = W^T in the MXU compute dtype (grid-invariant)
    p_ref          : (3, H) f32, rows = [bias, gamma, beta] (grid-invariant)
    o_ref          : (tm, H) output tile
    """
    # Cast the activations to the weight's compute dtype right before the
    # matmul (VPU cast instead of an extra HBM pass); f32 MXU accumulation.
    x = x_ref[...].astype(w_ref.dtype)
    h = jnp.dot(x, w_ref[...], preferred_element_type=jnp.float32)

    bias = p_ref[0:1, :]
    gamma = p_ref[1:2, :]
    beta = p_ref[2:3, :]

    # Dropout: inference mode -> identity.
    # TODO(synk): training-mode dropout would use pltpu.prng_seed / prng_random_bits.

    # Bias + residual; LayerNorm math stays in f32.
    h = h + bias + res_ref[...].astype(jnp.float32)

    # LayerNorm over the last dim (population variance, eps inside rsqrt).
    # One pass over h: var = E[h^2] - mean^2 (no full-tile `centered` temp).
    inv_n = 1.0 / h.shape[-1]
    mean = jnp.sum(h, axis=-1, keepdims=True) * inv_n
    mean_sq = jnp.sum(h * h, axis=-1, keepdims=True) * inv_n
    var = jnp.maximum(mean_sq - mean * mean, 0.0)
    out = (h - mean) * jax.lax.rsqrt(var + eps) * gamma + beta
    o_ref[...] = out.astype(o_ref.dtype)


def prepare_cross_self_output_params(weight, bias, gamma, beta,
                                     compute_dtype=jnp.bfloat16):
    """One-time (parameter-load time) preprocessing.

    weight: (H, H) PyTorch nn.Linear layout (out_features, in_features).
    Returns (w_t, params): W^T in the MXU compute dtype and a packed (3, H)
    f32 [bias; gamma; beta] (one DMA / buffer pair inside the kernel).
    """
    w_t = jnp.asarray(weight).T.astype(compute_dtype)
    params = jnp.stack([
        jnp.asarray(bias, dtype=jnp.float32),
        jnp.asarray(gamma, dtype=jnp.float32),
        jnp.asarray(beta, dtype=jnp.float32),
    ], axis=0)
    return w_t, params


def cross_self_output(hidden_states, input_tensor, w_t, params, *,
                      eps=1e-12, tm=None):
    """hidden_states, input_tensor: (B, S, H); w_t: (H, H) prepared W^T in the
    compute dtype; params: (3, H) f32 [bias; gamma; beta]."""
    B, S, H = hidden_states.shape
    assert input_tensor.shape == (B, S, H)
    assert w_t.shape == (H, H)
    assert params.shape == (3, H)

    rows = B * S
    out_dtype = hidden_states.dtype

    # Free reshapes (no HBM copy), no padding passes.
    x2d = hidden_states.reshape(rows, H)
    r2d = input_tensor.reshape(rows, H)

    tm, vmem_limit = _choose_row_tile_and_vmem(
        rows, H, x2d.dtype, r2d.dtype, out_dtype, w_t.dtype, tm)
    grid = (pl.cdiv(rows, tm),)

    kernel = functools.partial(_cross_self_output_kernel, eps=float(eps))

    out2d = pl.pallas_call(
        kernel,
        out_shape=jax.ShapeDtypeStruct((rows, H), out_dtype),
        grid_spec=pltpu.PrefetchScalarGridSpec(
            num_scalar_prefetch=0,
            grid=grid,
            in_specs=[
                pl.BlockSpec((tm, H), lambda i: (i, 0)),   # hidden_states tile
                pl.BlockSpec((tm, H), lambda i: (i, 0)),   # residual tile
                pl.BlockSpec((H, H), lambda i: (0, 0)),    # W^T (grid-invariant)
                pl.BlockSpec((3, H), lambda i: (0, 0)),    # [bias; gamma; beta]
            ],
            out_specs=pl.BlockSpec((tm, H), lambda i: (i, 0)),
        ),
        compiler_params=pltpu.CompilerParams(
            dimension_semantics=("parallel",),
            vmem_limit_bytes=vmem_limit,
        ),
    )(x2d, r2d, w_t, params)

    return out2d.reshape(B, S, H)


def cross_self_output_raw(hidden_states, input_tensor, weight, bias, gamma,
                          beta, *, eps=1e-12, tm=None,
                          compute_dtype=jnp.bfloat16):
    """Convenience wrapper taking raw PyTorch-layout parameters.  Prefer
    calling prepare_cross_self_output_params() once at parameter-load time."""
    w_t, params = prepare_cross_self_output_params(weight, bias, gamma, beta,
                                                   compute_dtype)
    return cross_self_output(hidden_states, input_tensor, w_t, params,
                             eps=eps, tm=tm)


if __name__ == "__main__":
    # Small config: batch=2, seq=8, hidden=32
    B, S, H = 2, 8, 32
    key = jax.random.PRNGKey(0)
    k1, k2, k3, k4 = jax.random.split(key, 4)

    hidden_states = jax.random.normal(k1, (B, S, H), dtype=jnp.float32)
    input_tensor = jax.random.normal(k2, (B, S, H), dtype=jnp.float32)

    # Deterministic parameter init (synthetic; mirrors nn.Linear/LayerNorm shapes)
    weight = jax.random.normal(k3, (H, H), dtype=jnp.float32) * 0.02   # (out, in)
    bias = jax.random.normal(k4, (H,), dtype=jnp.float32) * 0.02
    gamma = jnp.ones((H,), dtype=jnp.float32)
    beta = jnp.zeros((H,), dtype=jnp.float32)

    # Pure-JAX f32 reference
    ref = hidden_states @ weight.T + bias + input_tensor
    mean = jnp.mean(ref, axis=-1, keepdims=True)
    var = jnp.mean((ref - mean) ** 2, axis=-1, keepdims=True)
    ref = (ref - mean) * jax.lax.rsqrt(var + 1e-12) * gamma + beta

    # Default path: bf16 MXU operands (loose tolerance vs f32 reference).
    w_t, params = prepare_cross_self_output_params(weight, bias, gamma, beta)
    out = cross_self_output(hidden_states, input_tensor, w_t, params)
    out = jax.block_until_ready(out)
    assert out.shape == (B, S, H)
    assert out.dtype == hidden_states.dtype
    assert jnp.allclose(out, ref, atol=2e-2, rtol=2e-2), "bf16-path mismatch vs reference"

    # f32-operand path (tight tolerance).
    w_t32, params32 = prepare_cross_self_output_params(
        weight, bias, gamma, beta, compute_dtype=jnp.float32)
    out32 = jax.block_until_ready(
        cross_self_output(hidden_states, input_tensor, w_t32, params32))
    assert jnp.allclose(out32, ref, atol=1e-4, rtol=1e-4), "f32-path mismatch vs reference"

    print("KERNEL_OK")
</pallas_src>

<mosaic_0001>
module attributes {stable_mosaic.version = 11 : i64} {
  func.func @_cross_self_output_kernel(%arg0: i32, %arg1: memref<8x32xf32, #tpu.memory_space<vmem>>, %arg2: memref<8x32xf32, #tpu.memory_space<vmem>>, %arg3: memref<32x32xbf16, #tpu.memory_space<vmem>>, %arg4: memref<3x32xf32, #tpu.memory_space<vmem>>, %arg5: memref<8x32xf32, #tpu.memory_space<vmem>>) attributes {dimension_semantics = [#tpu.dimension_semantics<parallel>], iteration_bounds = array<i64: 2>, scalar_prefetch = 0 : i64, scratch_operands = 0 : i64, tpu.core_type = #tpu.core_type<tc>, window_params = [{transform_indices = @transform_0, window_bounds = array<i64: 8, 32>}, {transform_indices = @transform_1, window_bounds = array<i64: 8, 32>}, {pipeline_mode = #tpu.pipeline_mode<synchronous>, transform_indices = @transform_2, window_bounds = array<i64: 32, 32>}, {pipeline_mode = #tpu.pipeline_mode<synchronous>, transform_indices = @transform_3, window_bounds = array<i64: 3, 32>}, {transform_indices = @transform_4, window_bounds = array<i64: 8, 32>}]} {
    %c0 = arith.constant 0 : index
    %c0_0 = arith.constant 0 : index
    %0 = vector.load %arg1[%c0, %c0_0] : memref<8x32xf32, #tpu.memory_space<vmem>>, vector<8x32xf32>
    %1 = arith.truncf %0 : vector<8x32xf32> to vector<8x32xbf16>
    %c0_1 = arith.constant 0 : index
    %c0_2 = arith.constant 0 : index
    %2 = vector.load %arg3[%c0_1, %c0_2] : memref<32x32xbf16, #tpu.memory_space<vmem>>, vector<32x32xbf16>
    %cst = arith.constant dense<0.000000e+00> : vector<8x32xf32>
    %3 = tpu.matmul %1, %2, %cst {dimension_numbers = #tpu.dot_dimension_numbers<[1], [0], [0], [1], [0, 0, 1, 1], [], []>} : vector<8x32xbf16>, vector<32x32xbf16>, vector<8x32xf32> -> vector<8x32xf32>
    %c0_3 = arith.constant 0 : index
    %c0_4 = arith.constant 0 : index
    %4 = vector.load %arg4[%c0_3, %c0_4] : memref<3x32xf32, #tpu.memory_space<vmem>>, vector<1x32xf32>
    %c1 = arith.constant 1 : index
    %c0_5 = arith.constant 0 : index
    %5 = vector.load %arg4[%c1, %c0_5] : memref<3x32xf32, #tpu.memory_space<vmem>>, vector<1x32xf32>
    %c2 = arith.constant 2 : index
    %c0_6 = arith.constant 0 : index
    %6 = vector.load %arg4[%c2, %c0_6] : memref<3x32xf32, #tpu.memory_space<vmem>>, vector<1x32xf32>
    %7 = vector.broadcast %4 : vector<1x32xf32> to vector<8x32xf32>
    %8 = arith.addf %3, %7 : vector<8x32xf32>
    %c0_7 = arith.constant 0 : index
    %c0_8 = arith.constant 0 : index
    %9 = vector.load %arg2[%c0_7, %c0_8] : memref<8x32xf32, #tpu.memory_space<vmem>>, vector<8x32xf32>
    %10 = arith.addf %8, %9 : vector<8x32xf32>
    %cst_9 = arith.constant dense<0.000000e+00> : vector<8xf32>
    %11 = vector.multi_reduction <add>, %10, %cst_9 [1] : vector<8x32xf32> to vector<8xf32>
    %12 = vector.shape_cast %11 : vector<8xf32> to vector<8x1xf32>
    %cst_10 = arith.constant 3.125000e-02 : f32
    %13 = vector.broadcast %cst_10 : f32 to vector<8x1xf32>
    %14 = arith.mulf %12, %13 : vector<8x1xf32>
    %15 = arith.mulf %10, %10 : vector<8x32xf32>
    %cst_11 = arith.constant dense<0.000000e+00> : vector<8xf32>
    %16 = vector.multi_reduction <add>, %15, %cst_11 [1] : vector<8x32xf32> to vector<8xf32>
    %17 = vector.shape_cast %16 : vector<8xf32> to vector<8x1xf32>
    %cst_12 = arith.constant 3.125000e-02 : f32
    %18 = vector.broadcast %cst_12 : f32 to vector<8x1xf32>
    %19 = arith.mulf %17, %18 : vector<8x1xf32>
    %20 = arith.mulf %14, %14 : vector<8x1xf32>
    %21 = arith.subf %19, %20 : vector<8x1xf32>
    %cst_13 = arith.constant 0.000000e+00 : f32
    %22 = vector.broadcast %cst_13 : f32 to vector<8x1xf32>
    %23 = arith.maximumf %21, %22 : vector<8x1xf32>
    %24 = vector.broadcast %14 : vector<8x1xf32> to vector<8x32xf32>
    %25 = arith.subf %10, %24 : vector<8x32xf32>
    %cst_14 = arith.constant 9.99999996E-13 : f32
    %26 = vector.broadcast %cst_14 : f32 to vector<8x1xf32>
    %27 = arith.addf %23, %26 : vector<8x1xf32>
    %28 = math.rsqrt %27 : vector<8x1xf32>
    %29 = vector.broadcast %28 : vector<8x1xf32> to vector<8x32xf32>
    %30 = arith.mulf %25, %29 : vector<8x32xf32>
    %31 = vector.broadcast %5 : vector<1x32xf32> to vector<8x32xf32>
    %32 = arith.mulf %30, %31 : vector<8x32xf32>
    %33 = vector.broadcast %6 : vector<1x32xf32> to vector<8x32xf32>
    %34 = arith.addf %32, %33 : vector<8x32xf32>
    %c0_15 = arith.constant 0 : index
    %c0_16 = arith.constant 0 : index
    %35 = vector.load %arg5[%c0_15, %c0_16] : memref<8x32xf32, #tpu.memory_space<vmem>>, vector<8x32xf32>
    tpu.vector_store %arg5[%c0_15, %c0_16], %34 {strides = array<i32>} : memref<8x32xf32, #tpu.memory_space<vmem>>, vector<8x32xf32>,
    return
  }
  func.func @transform_0(%arg0: i32) -> (i32, i32) {
    %c0_i32 = arith.constant 0 : i32
    %c0_i32_0 = arith.constant 0 : i32
    return %arg0, %c0_i32 : i32, i32
  }
  func.func @transform_1(%arg0: i32) -> (i32, i32) {
    %c0_i32 = arith.constant 0 : i32
    %c0_i32_0 = arith.constant 0 : i32
    return %arg0, %c0_i32 : i32, i32
  }
  func.func @transform_2(%arg0: i32) -> (i32, i32) {
    %c0_i32 = arith.constant 0 : i32
    %c0_i32_0 = arith.constant 0 : i32
    %c0_i32_1 = arith.constant 0 : i32
    return %c0_i32, %c0_i32_0 : i32, i32
  }
  func.func @transform_3(%arg0: i32) -> (i32, i32) {
    %c0_i32 = arith.constant 0 : i32
    %c0_i32_0 = arith.constant 0 : i32
    %c0_i32_1 = arith.constant 0 : i32
    return %c0_i32, %c0_i32_0 : i32, i32
  }
  func.func @transform_4(%arg0: i32) -> (i32, i32) {
    %c0_i32 = arith.constant 0 : i32
    %c0_i32_0 = arith.constant 0 : i32
    return %arg0, %c0_i32 : i32, i32
  }
}

</mosaic_0001>

<bundles_post_ra>
// kernel: tpu_custom_call.1
= control target key start
LH: loop header
LB: loop body
LE: loop exit
PB: predicated region body
PF: predicated region fallthrough
CT: control target
= control target key end

     0   :  { %s1028_s0 = inlined_call_operand.hbm [shape: f32[16,32], index: 0, kind: input, shape index: {}]   ;;  %s1029_s1 = inlined_call_operand.hbm [shape: f32[16,32], index: 1, kind: input, shape index: {}]   ;;  %s1030_s2 = inlined_call_operand.hbm [shape: bf16[32,32], index: 2, kind: input, shape index: {}]   ;;  %s1031_s3 = inlined_call_operand.vmem [shape: f32[3,32], index: 3, kind: input, shape index: {}]   ;;  %s1032_s4 = inlined_call_operand.hbm [shape: f32[16,32], index: 4, kind: output, shape index: {}]  }
   0x1   :  { %1037 = sst [smem:[#allocation13_spill]] %s1030_s2 }
   0x2   :  { %9 = vsyncpa [#allocation3], 0 }
   0x3   :  { %11 = vsyncpa [#allocation3 + $0x1], 0 }
   0x4   :  { %12 = vsyncpa [#allocation6], 0 }
   0x5   :  { %14 = vsyncpa [#allocation6 + $0x1], 0 }
   0x6   :  { %15 = vsyncpa [#allocation4], 0 }
   0x7   :  { %17 = vsyncpa [#allocation4 + $0x1], 0  ;;  %s780_s15 = smov 0   ;;  %s782_s16 = smov 0  }
   0x8   :  { %s784_s17 = smov 0   ;;  %s786_s18 = smov 0  }
   0x9 LB: > { %s801_s19 = sadd.s32 4294967295, %s745_s18   ;;  %s479_s20 = sadd.s32 4294967294, %s745_s18   ;;  %s745_s18 = sphi %s786_s18, %s1056_s18   ;;  %s741_s17 = sphi %s784_s17, %s1055_s17   ;;  %s737_s16 = sphi %s782_s16, %s1054_s16   ;;  %s733_s15 = sphi %s780_s15, %s1053_s15  }
   0xa   : > { %p43_p0 = scmp.ne.s32.totalorder %s737_s16, %s733_s15  ;;  %p1033_p1 = scmp.eq.s32.totalorder %s801_s19, 0 }
   0xb   : > { %p141_p3 = scmp.eq.s32.totalorder %s479_s20, 1  ;;  %p480_p5 = scmp.ge.s32.totalorder %s745_s18, 1 }
   0xc   : > { %p810_p4 = por %p1033_p1, %p43_p0  ;;  %p148_p7 = scmp.lt.s32.totalorder %s745_s18, 3 }
   0xd   : > { %p815_p6 = por %p141_p3, %p43_p0  ;;  %s747_s24 = smov [#allocation7]  }
   0xe   : > { %s1038_s21 = scalar_select %p810_p4, 1, 0 }
   0xf   : > { %s1039_s22 = scalar_select %p815_p6, 1, 0 }
  0x10   : > { %p820_p8 = pnand %p480_p5, %p148_p7  ;;  %s160_s25 = sshll.u32 %s747_s24, 4  ;;  %s824_s25 = int_to_ptr.vmem [resolvable:$true] %s160_s25 }
  0x11   : > { %s836_s27 = sadd.s32 1, %s745_s18   ;;  %s30_s28 = sadd.s32 1, %s741_s17 }
  0x12   : > { %s1040_s23 = scalar_select %p820_p8, 1, 0 }
  0x13   : > { %p523_p9 = pneg %p820_p8  ;;  %s27_s29 = ssub.s32 %s745_s18, %s836_s27 }
  0x14   : > { %s1042_s2 = sld [smem:[#allocation13_spill]] }
  0x15   : > { %p831_p11 = pnand %p523_p9, %p1033_p1 }
  0x17   : > { %p585_p13 = pneg %p831_p11 }
  0x1a   : > { %s583_s6 = scalar_lea.hbm %s1042_s2, 256 }
  0x1b   : > { %p584_p12 = scmp.ne.s32.totalorder %s1042_s2, %s583_s6  ;;  %p590_p5 = scmp.lt.u32.totalorder %s583_s6, %s1042_s2 }
  0x1d   : > { %p586_p0 = pnand %p585_p13, %p584_p12 }
  0x1f   : > { %p587_p3 = pneg %p586_p0 }
  0x21   : > { %p592_p7 = pnand %p590_p5, %p587_p3 }
  0x23   : > { %595 = shalt.err (!%p592_p7)
}
  0x24   : > { %s596_s11 = scalar_lea.vmem %s824_s25, 256  ;;  %p604_p2 = scmp.lt.s32.totalorder %s824_s25, %s824_s25 }
  0x25   : > { %p597_p9 = scmp.ne.s32.totalorder %s824_s25, %s596_s11  ;;  %p605_p6 = scmp.lt.s32.totalorder %s596_s11, %s596_s11 }
  0x27   : > { %p599_p10 = pnand %p597_p9, %p585_p13  ;;  %p606_p4 = por %p605_p6, %p604_p2 }
  0x29   : > { %p600_p1 = pneg %p599_p10 }
  0x2b   : > { %p607_p8 = pnand %p606_p4, %p600_p1 }
  0x2d   : > { %610 = shalt.err (!%p607_p8)
}
  0x2e   : > { %s748_s12 = smov 64   ;;  %s749_s13 = smov 4  }
  0x2f   : > { %526 = dma.hbm_to_vmem [thread:$0]  (!%p831_p11), %s1042_s2, 256, %s824_s25, [#allocation6], %s748_s12, %s748_s12, %s749_s13  }
  0x30   : > { %p28_p2 = scmp.eq.s32.totalorder %s27_s29, 0  ;;  %p37_p1 = scmp.ne.s32.totalorder %s741_s17, %s737_s16 }
  0x31   : > { %p38_p4 = scmp.eq.s32.totalorder %s745_s18, 0  ;;  %p539_p6 = scmp.lt.s32.totalorder %s745_s18, 2 }
  0x32   : > { %s867_s24 = scalar_select %p28_p2, %s741_s17, %s30_s28  }
  0x33   : > { %p39_p8 = por %p38_p4, %p37_p1  ;;  %p1043_p10 = scmp.eq.s32.totalorder %s801_s19, 1 }
  0x34   : > { %s177_s5 = sand.u32 1, %s741_s17   ;;  %s484_s6 = sshll.u32 %s745_s18, 7 }
  0x35   : > { %p871_p12 = por %p1043_p10, %p37_p1  ;;  %s877_s7 = sshll.u32 %s177_s5, 3 }
  0x36   : > { %s882_s25 = scalar_lea.hbm %s1028_s0, %s484_s6  ;;  %s181_s28 = scalar_lea.vmem [#allocation2], %s877_s7 }
  0x37   : > { %s1044_s30 = scalar_select %p871_p12, 1, 0 }
  0x38   : > { %s188_s29 = sshll.u32 %s181_s28, 4  ;;  %p885_p11 = pnand %p539_p6, %p39_p8  ;;  %s889_s29 = int_to_ptr.vmem [resolvable:$true] %s188_s29 }
  0x39   : > { %s894_s12 = scalar_lea.hbm %s1029_s1, %s484_s6  ;;  %s178_s13 = scalar_lea.sflag [#allocation3], %s177_s5 }
  0x3a   : > { %s611_s14 = scalar_lea.hbm %s882_s25, 128  ;;  %p613_p0 = pneg %p885_p11 }
  0x3b   : > { %p612_p13 = scmp.ne.s32.totalorder %s882_s25, %s611_s14  ;;  %s616_s8 = scalar_lea.hbm %s1028_s0, 256 }
  0x3c   : > { %p617_p7 = scmp.lt.u32.totalorder %s882_s25, %s1028_s0  ;;  %p618_p9 = scmp.lt.u32.totalorder %s616_s8, %s611_s14 }
  0x3d   : > { %p614_p3 = pnand %p613_p0, %p612_p13  ;;  %p620_p1 = scmp.lt.u32.totalorder %s611_s14, %s882_s25 }
  0x3e   : > { %p619_p2 = por %p618_p9, %p617_p7 }
  0x3f   : > { %p615_p5 = pneg %p614_p3 }
  0x40   : > { %p621_p4 = por %p620_p1, %p619_p2 }
  0x42   : > { %p622_p6 = pnand %p621_p4, %p615_p5 }
  0x44   : > { %625 = shalt.err (!%p622_p6)
}
  0x45   : > { %s626_s5 = scalar_lea.vmem %s889_s29, 128  ;;  %s750_s6 = smov [#allocation2]  }
  0x46   : > { %p627_p8 = scmp.ne.s32.totalorder %s889_s29, %s626_s5  ;;  %s631_s10 = sshll.u32 %s750_s6, 4  ;;  %s632_s10 = int_to_ptr.vmem [resolvable:$false] %s631_s10 }
  0x47   : > { %s633_s2 = scalar_lea.vmem %s632_s10, 256  ;;  %p634_p3 = scmp.lt.s32.totalorder %s889_s29, %s632_s10 }
  0x48   : > { %p629_p10 = pnand %p627_p8, %p613_p0  ;;  %p635_p7 = scmp.lt.s32.totalorder %s633_s2, %s626_s5 }
  0x4a   : > { %p630_p13 = pneg %p629_p10  ;;  %p636_p9 = por %p635_p7, %p634_p3 }
  0x4c   : > { %p637_p2 = pnand %p636_p9, %p630_p13 }
  0x4e   : > { %640 = shalt.err (!%p637_p2)
}
  0x4f   : > { %530 = dma.hbm_to_vmem [thread:$0]  (!%p885_p11), %s882_s25, 128, %s889_s29, %s178_s13  }
  0x50   : > { %s195_s11 = sand.u32 1, %s745_s18   ;;  %s199_s14 = scalar_lea.vmem [#allocation5], %s877_s7 }
  0x51   : > { %s206_s20 = sshll.u32 %s199_s14, 4  ;;  %s196_s26 = scalar_lea.sflag [#allocation6], %s195_s11  ;;  %s207_s20 = int_to_ptr.vmem [resolvable:$true] %s206_s20 }
  0x52   : > { %s641_s8 = scalar_lea.hbm %s894_s12, 128  ;;  %s646_s6 = scalar_lea.hbm %s1029_s1, 256 }
  0x53   : > { %p642_p5 = scmp.ne.s32.totalorder %s894_s12, %s641_s8  ;;  %p647_p6 = scmp.lt.u32.totalorder %s894_s12, %s1029_s1 }
  0x54   : > { %p648_p8 = scmp.lt.u32.totalorder %s646_s6, %s641_s8  ;;  %p650_p13 = scmp.lt.u32.totalorder %s641_s8, %s894_s12 }
  0x55   : > { %p644_p1 = pnand %p642_p5, %p613_p0 }
  0x56   : > { %p649_p10 = por %p648_p8, %p647_p6 }
  0x57   : > { %p645_p4 = pneg %p644_p1 }
  0x58   : > { %p651_p3 = por %p650_p13, %p649_p10 }
  0x5a   : > { %p652_p7 = pnand %p651_p3, %p645_p4 }
  0x5c   : > { %655 = shalt.err (!%p652_p7)
}
  0x5d   : > { %s656_s7 = scalar_lea.vmem %s207_s20, 128  ;;  %s751_s25 = smov [#allocation5]  }
  0x5e   : > { %p657_p9 = scmp.ne.s32.totalorder %s207_s20, %s656_s7  ;;  %s661_s29 = sshll.u32 %s751_s25, 4  ;;  %s662_s29 = int_to_ptr.vmem [resolvable:$false] %s661_s29 }
  0x5f   : > { %s663_s13 = scalar_lea.vmem %s662_s29, 256  ;;  %p664_p1 = scmp.lt.s32.totalorder %s207_s20, %s662_s29 }
  0x60   : > { %p659_p2 = pnand %p657_p9, %p613_p0  ;;  %p665_p12 = scmp.lt.s32.totalorder %s663_s13, %s656_s7 }
  0x62   : > { %p660_p5 = pneg %p659_p2  ;;  %p666_p6 = por %p665_p12, %p664_p1 }
  0x64   : > { %p667_p8 = pnand %p666_p6, %p660_p5 }
  0x66   : > { %670 = shalt.err (!%p667_p8)
}
  0x67   : > { %533 = dma.hbm_to_vmem [thread:$0]  (!%p885_p11), %s894_s12, 128, %s207_s20, %s196_s26  }
  0x68   : > { %p1046_p4 = scmp.ne.s32.totalorder %s1040_s23, 0 }
  0x69   : > { %s945_s11 = sand.u32 (!%p1046_p4), 1, %s737_s16   ;;  %p1047_p12 = scmp.ne.s32.totalorder (!%p1046_p4), %s1038_s21, 0 }
  0x6a   : > { %215 = sbr.rel (%p1046_p4) target bundleno = 531 (0x213), region = 36  ;;  %s948_s14 = sshll.u32 (!%p1046_p4), %s945_s11, 3 }
  0x6b   : > { %s218_s8 = scalar_lea.sflag (!%p1046_p4), [#allocation3], %s945_s11  ;;  %s221_s28 = scalar_lea.vmem (!%p1046_p4), [#allocation2], %s948_s14 }
  0x71   : > { %716 = dma.done.wait (%p1047_p12), %s218_s8, 128  }
  0x72   : > { %718 = vsyncadd (%p1047_p12), %s218_s8, 4294967168  ;;  %s226_s23 = sand.u32 1, %s801_s19   ;;  %s230_s12 = scalar_lea.vmem [#allocation5], %s948_s14 }
  0x73   : > { %s227_s9 = scalar_lea.sflag [#allocation6], %s226_s23 }
  0x74   : > { %720 = dma.done.wait (%p1047_p12), %s227_s9, 128  }
  0x75   : > { %722 = vsyncadd (%p1047_p12), %s227_s9, 4294967168  ;;  %p1048_p11 = scmp.eq.s32.totalorder %s801_s19, 0 }
  0x77   : > { %724 = dma.done.wait (%p1048_p11), [#allocation6], 256   ;;  %p1049_p0 = pmov %p1048_p11 }
  0x78   : > { %v752_v0 = vmov 0.0   ;;  %vm753_vm0 = vmmov 0   ;;  %v579_v1 = vld [vmem:[#allocation7] sm:$0xff]   ;;  %v580_v2 = vld [vmem:[#allocation7 + $0x8] sm:$0xff]   ;;  %vm290_vm1 = vcmask 261120   ;;  %v334_v7 = vld [vmem:[%s230_s12] sm:$0xff] }
  0x79   : > { %726 = vsyncadd (%p1049_p0), [#allocation6], 4294967040  ;;  %505 = vmatprep.subr.bf16.mxu0 %v752_v0  ;;  %509 = vmatprep.mubr.msk.bf16.mxu0 %vm753_vm0, %v752_v0  ;;  %v265_v3 = vld [vmem:[%s221_s28] sm:$0xff]  ;;  %s499_s2 = sshll.u32 %s801_s19, 7  ;;  %s263_s7 = scalar_lea.vmem [#allocation8], %s948_s14 }
  0x7a   : > { %506 = vmatpush3.bf16.msra.mxu0 %v579_v1  ;;  %v266_v4 = vpack.c.bf16 %v265_v3, %v265_v3  ;;  %v492_v5 = vld [vmem:[%s1031_s3] ss:$0 sm:$0xff]  ;;  %v496_v26 = vld [vmem:[%s1031_s3 + $0x1] ss:$0 sm:$0xff]  ;;  %v497_v28 = vld [vmem:[%s1031_s3 + $0x2] ss:$0 sm:$0xff]  ;;  %s983_s8 = scalar_lea.hbm %s1032_s4, %s499_s2 }
  0x7b   : > { %507 = vmatprep.subr.bf16.mxu0 %v752_v0  ;;  %s377_s25 = sshll.u32 %s263_s7, 4  ;;  %s364_s28 = scalar_lea.sflag [#allocation4], %s945_s11  ;;  %s985_s25 = int_to_ptr.vmem [resolvable:$true] %s377_s25 }
  0x7c   : > { %s671_s23 = scalar_lea.vmem %s985_s25, 128  ;;  %p1050_p13 = scmp.ne.s32.totalorder %s1044_s30, 0 }
  0x7d   : > { %p672_p10 = scmp.ne.s32.totalorder %s985_s25, %s671_s23  ;;  %s754_s19 = smov [#allocation8]  }
  0x7e   : > { %508 = vmatpush3.bf16.msra.mxu0 %v580_v2  ;;  %s675_s14 = sshll.u32 %s754_s19, 4  ;;  %s676_s14 = int_to_ptr.vmem [resolvable:$false] %s675_s14 }
  0x7f   : > { %p673_p3 = pnand %p672_p10, %p1050_p13  ;;  %s677_s9 = scalar_lea.vmem %s676_s14, 256 }
  0x80   : > { %p678_p9 = scmp.lt.s32.totalorder %s985_s25, %s676_s14  ;;  %p679_p2 = scmp.lt.s32.totalorder %s677_s9, %s671_s23 }
  0x81   : > { %510 = vmatmul.mubr.msk.bf16.vlgmr.msra.gmra.mrb[0].mxu0 %vm290_vm1, %v266_v4  ;;  %p674_p7 = pneg %p673_p3 }
  0x82   : > { %p680_p5 = por %p679_p2, %p678_p9 }
  0x84   : > { %p681_p1 = pnand %p680_p5, %p674_p7 }
 0x154   : > { %v328_v6 = vpop.f32.mrb[0].mxu0 }
 0x155   : > { %v329_v8 = vadd.f32 %v492_v5, %v328_v6  ;;  %v511_v9 = vpop.f32.mrb[1].mxu0 }
 0x156   : > { %v331_v10 = vpop.f32.mrb[2].mxu0 }
 0x157   : > { %v335_v11 = vadd.f32 %v334_v7, %v329_v8  ;;  %v512_v12 = vpop.f32.mrb[3].mxu0 }
 0x159   : > { %v336_v13 = vsel %vm290_vm1, %v335_v11, 0.0  ;;  %v340_v14 = vmul.f32 %v335_v11, %v335_v11 }
 0x15a   : > { %337 = vadd.xlane.f32.xlu0 %v336_v13 }
 0x15b   : > { %v341_v15 = vsel %vm290_vm1, %v340_v14, 0.0 }
 0x15e   : > { %342 = vadd.xlane.f32.xlu0 %v341_v15 }
 0x1e7   : > { %v338_v16 = vpop.xlane.xlu0 %337 }
 0x1e8   : > { %v339_v17 = vmul.f32 0.03125, %v338_v16 }
 0x1ea   : > { %v345_v19 = vmul.f32 %v339_v17, %v339_v17  ;;  %v348_v24 = vsub.f32 %v335_v11, %v339_v17 }
 0x1eb   : > { %v343_v18 = vpop.xlane.xlu0 %342 }
 0x1ec   : > { %v344_v20 = vmul.f32 0.03125, %v343_v18 }
 0x1ee   : > { %v346_v21 = vsub.f32 %v344_v20, %v345_v19 }
 0x1f0   : > { %v347_v22 = vmax.f32 %v346_v21, 0.0 }
 0x1f2   : > { %v349_v23 = vadd.f32 1e-12, %v347_v22 }
 0x1f4   : > { %581 = vrsqrt.f32 %v349_v23 }
 0x1fe   : > { %v582_v25 = vpop.eup %581 }
 0x1ff   : > { %v351_v27 = vmul.f32 %v582_v25, %v348_v24 }
 0x201   : > { %v356_v29 = vmul.f32 %v496_v26, %v351_v27 }
 0x203   : > { %v361_v30 = vadd.f32 %v497_v28, %v356_v29 }
 0x205   : > { %362 = vst.msk [vmem:[%s263_s7] sm:$0xff] %vm290_vm1, %v361_v30 }
 0x206   : > { %684 = shalt.err (!%p681_p1)
}
 0x207   : > { %s685_s11 = scalar_lea.hbm %s983_s8, 128  ;;  %s689_s20 = scalar_lea.hbm %s1032_s4, 256 }
 0x208   : > { %p686_p6 = scmp.ne.s32.totalorder %s983_s8, %s685_s11  ;;  %p690_p12 = scmp.lt.u32.totalorder %s983_s8, %s1032_s4 }
 0x209   : > { %p691_p11 = scmp.lt.u32.totalorder %s689_s20, %s685_s11  ;;  %p693_p10 = scmp.lt.u32.totalorder %s685_s11, %s983_s8 }
 0x20a   : > { %p687_p8 = pnand %p686_p6, %p1050_p13 }
 0x20b   : > { %p692_p0 = por %p691_p11, %p690_p12 }
 0x20c   : > { %p688_p4 = pneg %p687_p8 }
 0x20d   : > { %p694_p3 = por %p693_p10, %p692_p0 }
 0x20f   : > { %p695_p7 = pnand %p694_p3, %p688_p4 }
 0x211   : > { %698 = shalt.err (!%p695_p7)
}
 0x212   : > { %521 = dma.vmem_to_hbm [thread:$0]  (%p1050_p13), %s985_s25, 128, %s983_s8, %s364_s28  }
 0x213 PF: > { %s389_s6 = sand.u32 1, %s733_s15   ;;  %p1051_p9 = scmp.ne.s32.totalorder %s1039_s22, 0 }
 0x214   : > { %p1052_p2 = scmp.ge.s32.totalorder %s745_s18, 2  ;;  %s390_s10 = scalar_lea.sflag [#allocation4], %s389_s6 }
 0x216   : > { %p535_p5 = pnand %p1052_p2, %p1051_p9 }
 0x218   : > { %728 = dma.done.wait (!%p535_p5), %s390_s10, 128  }
 0x219   : > { %730 = vsyncadd (!%p535_p5), %s390_s10, 4294967168  ;;  %p20_p1 = scmp.ge.s32.totalorder %s836_s27, 4   ;;  %s1053_s15 = smov %s737_s16 }
 0x21a   : > { %s1054_s16 = smov %s741_s17  ;;  %s1055_s17 = smov %s867_s24 }
 0x21b   : > { %s1056_s18 = smov %s836_s27  ;;  %22 = sbr.rel (!%p20_p1) target bundleno = 9 (0x9), region = 98 }
 0x222   :  { %395 = vsyncpa [#allocation3], 1 }
 0x223   :  { %397 = vsyncpa [#allocation3 + $0x1], 1 }
 0x224   :  { %398 = vsyncpa [#allocation6], 1 }
 0x225   :  { %400 = vsyncpa [#allocation6 + $0x1], 1 }
 0x226   :  { %401 = vsyncpa [#allocation4], 1 }
 0x227   :  { %403 = vsyncpa [#allocation4 + $0x1], 1 }

</bundles_post_ra>
